<compile_context>
chip_gen: v7x
topology: tpu7x:2x2x1
jax: 0.10.0
libtpu: 0.0.40
codegen_flags: <defaults>
</compile_context>

<pallas_src>
import jax
import jax.numpy as jnp
from jax import lax
from jax.experimental import pallas as pl
from jax.experimental.pallas import tpu as pltpu


# ----------------------------- Pallas kernel --------------------------------

def bilstm_kernel(gin_ref, lo_ref, hi_ref, whh_ref, out_ref, h_ref, c_ref):
    """One grid step = one time-chunk of the fused (fwd + reversed-bwd) LSTM.

    gin_ref : (tc, B, 8H) precomputed input gates (bias folded in)
    lo_ref  : (B, 2H) first valid global step per state lane
    hi_ref  : (B, 2H) one-past-last valid global step per state lane
    whh_ref : (2H, 8H) block-diagonal recurrent weight
    out_ref : (B, 2H)  [h_fwd_final | h_bwd_final]
    h_ref/c_ref : (B, 2H) persistent state scratch
    """
    tc, B, G = gin_ref.shape          # G = 8H (4 gate groups x 2 directions)
    H2 = G // 4                       # 2H     (fused [fwd | bwd] state width)
    ct = pl.program_id(0)

    @pl.when(ct == 0)
    def _init():
        h_ref[...] = jnp.zeros_like(h_ref)
        c_ref[...] = jnp.zeros_like(c_ref)

    lo = lo_ref[...]                  # loop-invariant: loaded once per chunk
    hi = hi_ref[...]
    whh = whh_ref[...]
    t0 = ct * tc

    h = h_ref[...]
    c = c_ref[...]
    # Trace-time unrolled chunk loop: only h @ W_hh + elementwise stay on the
    # serial path (input projection already hoisted to the wrapper).
    for s in range(tc):
        t = t0 + s
        gates = gin_ref[s] + jnp.dot(h, whh, preferred_element_type=jnp.float32)
        sig = jax.nn.sigmoid(gates[:, : 3 * H2])      # [i | f | o], both dirs
        g_t = jnp.tanh(gates[:, 3 * H2:])             # [g], both dirs
        i_g = sig[:, 0:H2]
        f_g = sig[:, H2:2 * H2]
        o_g = sig[:, 2 * H2:3 * H2]
        c_new = f_g * c + i_g * g_t
        h_new = o_g * jnp.tanh(c_new)
        mask = (t >= lo) & (t < hi)                   # pack_padded semantics
        h = jnp.where(mask, h_new, h)
        c = jnp.where(mask, c_new, c)
    h_ref[...] = h
    c_ref[...] = c

    @pl.when(ct == pl.num_programs(0) - 1)
    def _store():
        out_ref[...] = h              # (B, 2H); lane-dense once H >= 64


# ------------------------------ JAX wrapper ----------------------------------

def word_lstm_bag_forward(sentences_x, words_per_sentence, params, *, time_chunk=4):
    """sentences_x: (B, T) int32 token ids; words_per_sentence: (B,) int32.

    Returns (B, 2H + E) = [BiLSTM final hidden states | EmbeddingBag sum]."""
    emb = params["embedding"]                         # (V, E), row 0 == 0 (pad)
    B, T = sentences_x.shape
    H = params["whh_f"].shape[1]
    lens = words_per_sentence.astype(jnp.int32)

    # ---- glue: embedding gather, produced directly time-major ---------------
    x_tm = jnp.take(emb, sentences_x.T, axis=0)       # (T, B, E)

    # ---- hoisted input projection for both directions (one big matmul each) -
    def in_proj(wih, b):                              # torch layout (4H, E), (4H,)
        return jnp.einsum('tbe,ge->tbg', x_tm, wih) + b     # (T,B,4H) [i|f|g|o]

    gi_f = in_proj(params["wih_f"], params["b_f"])
    gi_b = in_proj(params["wih_b"], params["b_b"])[::-1]    # time-reversed stream

    # regroup gate columns: [i_f,i_b | f_f,f_b | o_f,o_b | g_f,g_b], each H wide
    def split4(a):
        return [a[..., k * H:(k + 1) * H] for k in range(4)]
    i_f, f_f, g_f, o_f = split4(gi_f)
    i_b, f_b, g_b, o_b = split4(gi_b)
    gates_in = jnp.concatenate(
        [i_f, i_b, f_f, f_b, o_f, o_b, g_f, g_b], axis=-1).astype(jnp.float32)

    # block-diagonal recurrent weight (2H, 8H), same grouped column order.
    def gate_rows(w):                                 # torch (4H, H) -> i,f,g,o (H,H)^T
        return [w[k * H:(k + 1) * H, :].T for k in range(4)]
    i_wf, f_wf, g_wf, o_wf = gate_rows(params["whh_f"])
    i_wb, f_wb, g_wb, o_wb = gate_rows(params["whh_b"])
    Z = jnp.zeros((H, H), jnp.float32)
    whh_block = jnp.concatenate(
        [jnp.concatenate([i_wf, Z, f_wf, Z, o_wf, Z, g_wf, Z], axis=1),
         jnp.concatenate([Z, i_wb, Z, f_wb, Z, o_wb, Z, g_wb], axis=1)],
        axis=0).astype(jnp.float32)                   # (2H, 8H)

    # per-lane valid-step bounds: fwd lanes valid for t in [0, len),
    # bwd lanes (time-reversed stream) valid for t in [T - len, T).
    lane_fwd = (jnp.arange(2 * H) < H)[None, :]                          # (1, 2H)
    lo = jnp.where(lane_fwd, 0, T - lens[:, None]).astype(jnp.int32)     # (B, 2H)
    hi = jnp.where(lane_fwd, lens[:, None], T).astype(jnp.int32)         # (B, 2H)

    # pad the time axis to whole chunks (padded steps are masked out).
    tc = max(1, min(time_chunk, T))
    num_chunks = pl.cdiv(T, tc)
    Tp = num_chunks * tc
    if Tp != T:
        gates_in = jnp.pad(gates_in, ((0, Tp - T), (0, 0), (0, 0)))

    lstm_out = pl.pallas_call(
        bilstm_kernel,
        out_shape=jax.ShapeDtypeStruct((B, 2 * H), jnp.float32),
        grid_spec=pltpu.PrefetchScalarGridSpec(
            num_scalar_prefetch=0,
            grid=(num_chunks,),
            in_specs=[
                pl.BlockSpec((tc, B, 8 * H), lambda t: (t, 0, 0)),   # streamed chunk
                pl.BlockSpec((B, 2 * H), lambda t: (0, 0)),          # lo (resident)
                pl.BlockSpec((B, 2 * H), lambda t: (0, 0)),          # hi (resident)
                pl.BlockSpec((2 * H, 8 * H), lambda t: (0, 0)),      # whh (resident)
            ],
            out_specs=pl.BlockSpec((B, 2 * H), lambda t: (0, 0)),
            scratch_shapes=[pltpu.VMEM((B, 2 * H), jnp.float32),     # h state
                            pltpu.VMEM((B, 2 * H), jnp.float32)],    # c state
        ),
        compiler_params=pltpu.CompilerParams(
            dimension_semantics=("arbitrary",)),      # sequential recurrence
    )(gates_in, lo, hi, whh_block)

    # ---- WordBag branch: EmbeddingBag(mode='sum') over each row (glue) ------
    bag_out = jnp.take(params["embedding_bag"], sentences_x, axis=0).sum(axis=1)

    return jnp.concatenate([lstm_out, bag_out], axis=1)               # (B, 2H+E)


# --------------------------- reference (pure JAX) -----------------------------

def word_lstm_bag_reference(sentences_x, words_per_sentence, params):
    emb = params["embedding"]
    x = jnp.take(emb, sentences_x, axis=0)            # (B, T, E)
    B, T = sentences_x.shape
    H = params["whh_f"].shape[1]
    lens = words_per_sentence.astype(jnp.int32)[:, None]

    def cell(x_t, h, c, wih, whh, b):                 # PyTorch gate order i,f,g,o
        gates = x_t @ wih.T + h @ whh.T + b
        i = jax.nn.sigmoid(gates[:, :H])
        f = jax.nn.sigmoid(gates[:, H:2 * H])
        g = jnp.tanh(gates[:, 2 * H:3 * H])
        o = jax.nn.sigmoid(gates[:, 3 * H:])
        c_new = f * c + i * g
        return o * jnp.tanh(c_new), c_new

    hf = jnp.zeros((B, H)); cf = jnp.zeros((B, H))
    hb = jnp.zeros((B, H)); cb = jnp.zeros((B, H))
    for t in range(T):
        hn, cn = cell(x[:, t], hf, cf, params["wih_f"], params["whh_f"], params["b_f"])
        m = t < lens
        hf = jnp.where(m, hn, hf); cf = jnp.where(m, cn, cf)
        tb = T - 1 - t
        hn, cn = cell(x[:, tb], hb, cb, params["wih_b"], params["whh_b"], params["b_b"])
        mb = tb < lens
        hb = jnp.where(mb, hn, hb); cb = jnp.where(mb, cn, cb)
    lstm_out = jnp.concatenate([hf, hb], axis=1)
    bag_out = jnp.take(params["embedding_bag"], sentences_x, axis=0).sum(axis=1)
    return jnp.concatenate([lstm_out, bag_out], axis=1)


# ---------------------------------- main --------------------------------------

def make_params(key, vocab_size, emb_size, hidden_size):
    ks = jax.random.split(key, 10)
    k = 1.0 / (hidden_size ** 0.5)

    def u(kk, shape):
        return jax.random.uniform(kk, shape, jnp.float32, -k, k)

    emb = 0.1 * jax.random.normal(ks[0], (vocab_size, emb_size), jnp.float32)
    emb = emb.at[0].set(0.0)                          # nn.Embedding padding_idx=0
    emb_bag = 0.1 * jax.random.normal(ks[9], (vocab_size, emb_size), jnp.float32)

    return {
        "embedding": emb,                             # WordLSTM embedding table
        "embedding_bag": emb_bag,                     # WordBag EmbeddingBag table
        # PyTorch nn.LSTM layouts: weight_ih (4H, E), weight_hh (4H, H),
        # bias = b_ih + b_hh (4H,), gate order (i, f, g, o).
        "wih_f": u(ks[1], (4 * hidden_size, emb_size)),
        "whh_f": u(ks[2], (4 * hidden_size, hidden_size)),
        "b_f": u(ks[3], (4 * hidden_size,)) + u(ks[4], (4 * hidden_size,)),
        "wih_b": u(ks[5], (4 * hidden_size, emb_size)),
        "whh_b": u(ks[6], (4 * hidden_size, hidden_size)),
        "b_b": u(ks[7], (4 * hidden_size,)) + u(ks[8], (4 * hidden_size,)),
    }


if __name__ == "__main__":
    vocab_size, emb_size, hidden_size = 50, 32, 32
    B, T = 4, 8

    key = jax.random.PRNGKey(0)
    kp, kx = jax.random.split(key)
    params = make_params(kp, vocab_size, emb_size, hidden_size)

    words_per_sentence = jnp.array([8, 5, 3, 6], dtype=jnp.int32)
    tok = jax.random.randint(kx, (B, T), 1, vocab_size, dtype=jnp.int32)
    pos = jnp.arange(T)[None, :]
    sentences_x = jnp.where(pos < words_per_sentence[:, None], tok, 0)   # 0 = pad

    out = word_lstm_bag_forward(sentences_x, words_per_sentence, params)
    out = jax.block_until_ready(out)

    ref = word_lstm_bag_reference(sentences_x, words_per_sentence, params)
    assert out.shape == (B, 2 * hidden_size + emb_size)
    assert jnp.allclose(out, ref, atol=1e-4, rtol=1e-4), "mismatch vs reference"

    print("KERNEL_OK")
</pallas_src>

<mosaic_0001>
module attributes {stable_mosaic.version = 11 : i64} {
  func.func @bilstm_kernel(%arg0: i32, %arg1: memref<4x4x256xf32, #tpu.memory_space<vmem>>, %arg2: memref<4x64xi32, #tpu.memory_space<vmem>>, %arg3: memref<4x64xi32, #tpu.memory_space<vmem>>, %arg4: memref<64x256xf32, #tpu.memory_space<vmem>>, %arg5: memref<4x64xf32, #tpu.memory_space<vmem>>, %arg6: memref<4x64xf32, #tpu.memory_space<vmem>>, %arg7: memref<4x64xf32, #tpu.memory_space<vmem>>) attributes {dimension_semantics = [#tpu.dimension_semantics<arbitrary>], iteration_bounds = array<i64: 2>, scalar_prefetch = 0 : i64, scratch_operands = 2 : i64, tpu.core_type = #tpu.core_type<tc>, window_params = [{transform_indices = @transform_0, window_bounds = array<i64: 4, 4, 256>}, {pipeline_mode = #tpu.pipeline_mode<synchronous>, transform_indices = @transform_1, window_bounds = array<i64: 4, 64>}, {pipeline_mode = #tpu.pipeline_mode<synchronous>, transform_indices = @transform_2, window_bounds = array<i64: 4, 64>}, {pipeline_mode = #tpu.pipeline_mode<synchronous>, transform_indices = @transform_3, window_bounds = array<i64: 64, 256>}, {pipeline_mode = #tpu.pipeline_mode<synchronous>, transform_indices = @transform_4, window_bounds = array<i64: 4, 64>}]} {
    %c0_i32 = arith.constant 0 : i32
    %0 = arith.cmpi eq, %arg0, %c0_i32 : i32
    %1 = arith.extui %0 : i1 to i32
    %c0_i32_0 = arith.constant 0 : i32
    %2 = arith.cmpi ne, %1, %c0_i32_0 : i32
    scf.if %2 {
      %cst_33 = arith.constant 0.000000e+00 : f32
      %126 = vector.broadcast %cst_33 : f32 to vector<4x64xf32>
      %c0_34 = arith.constant 0 : index
      %c0_35 = arith.constant 0 : index
      %127 = vector.load %arg6[%c0_34, %c0_35] : memref<4x64xf32, #tpu.memory_space<vmem>>, vector<4x64xf32>
      tpu.vector_store %arg6[%c0_34, %c0_35], %126 {strides = array<i32>} : memref<4x64xf32, #tpu.memory_space<vmem>>, vector<4x64xf32>,
      %cst_36 = arith.constant 0.000000e+00 : f32
      %128 = vector.broadcast %cst_36 : f32 to vector<4x64xf32>
      %c0_37 = arith.constant 0 : index
      %c0_38 = arith.constant 0 : index
      %129 = vector.load %arg7[%c0_37, %c0_38] : memref<4x64xf32, #tpu.memory_space<vmem>>, vector<4x64xf32>
      tpu.vector_store %arg7[%c0_37, %c0_38], %128 {strides = array<i32>} : memref<4x64xf32, #tpu.memory_space<vmem>>, vector<4x64xf32>,
    } else {
    }
    %c0 = arith.constant 0 : index
    %c0_1 = arith.constant 0 : index
    %3 = vector.load %arg2[%c0, %c0_1] : memref<4x64xi32, #tpu.memory_space<vmem>>, vector<4x64xi32>
    %c0_2 = arith.constant 0 : index
    %c0_3 = arith.constant 0 : index
    %4 = vector.load %arg3[%c0_2, %c0_3] : memref<4x64xi32, #tpu.memory_space<vmem>>, vector<4x64xi32>
    %c0_4 = arith.constant 0 : index
    %c0_5 = arith.constant 0 : index
    %5 = vector.load %arg4[%c0_4, %c0_5] : memref<64x256xf32, #tpu.memory_space<vmem>>, vector<64x256xf32>
    %c4_i32 = arith.constant 4 : i32
    %6 = arith.muli %arg0, %c4_i32 : i32
    %c0_6 = arith.constant 0 : index
    %c0_7 = arith.constant 0 : index
    %7 = vector.load %arg6[%c0_6, %c0_7] : memref<4x64xf32, #tpu.memory_space<vmem>>, vector<4x64xf32>
    %c0_8 = arith.constant 0 : index
    %c0_9 = arith.constant 0 : index
    %8 = vector.load %arg7[%c0_8, %c0_9] : memref<4x64xf32, #tpu.memory_space<vmem>>, vector<4x64xf32>
    %c0_i32_10 = arith.constant 0 : i32
    %9 = arith.addi %6, %c0_i32_10 : i32
    %c0_11 = arith.constant 0 : index
    %c0_12 = arith.constant 0 : index
    %c0_13 = arith.constant 0 : index
    %10 = vector.load %arg1[%c0_11, %c0_12, %c0_13] : memref<4x4x256xf32, #tpu.memory_space<vmem>>, vector<1x4x256xf32>
    %11 = vector.shape_cast %10 : vector<1x4x256xf32> to vector<4x256xf32>
    %cst = arith.constant dense<0.000000e+00> : vector<4x256xf32>
    %12 = tpu.matmul %7, %5, %cst {dimension_numbers = #tpu.dot_dimension_numbers<[1], [0], [0], [1], [0, 0, 1, 1], [], []>} : vector<4x64xf32>, vector<64x256xf32>, vector<4x256xf32> -> vector<4x256xf32>
    %13 = arith.addf %11, %12 : vector<4x256xf32>
    %14 = vector.extract_strided_slice %13 {offsets = [0, 0], sizes = [4, 192], strides = [1, 1]} : vector<4x256xf32> to vector<4x192xf32>
    %15 = arith.negf %14 : vector<4x192xf32>
    %16 = math.exp %15 : vector<4x192xf32>
    %cst_14 = arith.constant 1.000000e+00 : f32
    %17 = vector.broadcast %cst_14 : f32 to vector<4x192xf32>
    %18 = arith.addf %17, %16 : vector<4x192xf32>
    %19 = arith.divf %17, %18 : vector<4x192xf32>
    %20 = vector.extract_strided_slice %13 {offsets = [0, 192], sizes = [4, 64], strides = [1, 1]} : vector<4x256xf32> to vector<4x64xf32>
    %21 = math.tanh %20 : vector<4x64xf32>
    %22 = vector.extract_strided_slice %19 {offsets = [0, 0], sizes = [4, 64], strides = [1, 1]} : vector<4x192xf32> to vector<4x64xf32>
    %23 = vector.extract_strided_slice %19 {offsets = [0, 64], sizes = [4, 64], strides = [1, 1]} : vector<4x192xf32> to vector<4x64xf32>
    %24 = vector.extract_strided_slice %19 {offsets = [0, 128], sizes = [4, 64], strides = [1, 1]} : vector<4x192xf32> to vector<4x64xf32>
    %25 = arith.mulf %23, %8 : vector<4x64xf32>
    %26 = arith.mulf %22, %21 : vector<4x64xf32>
    %27 = arith.addf %25, %26 : vector<4x64xf32>
    %28 = math.tanh %27 : vector<4x64xf32>
    %29 = arith.mulf %24, %28 : vector<4x64xf32>
    %30 = vector.broadcast %9 : i32 to vector<4x64xi32>
    %31 = arith.cmpi sge, %30, %3 : vector<4x64xi32>
    %32 = vector.broadcast %9 : i32 to vector<4x64xi32>
    %33 = arith.cmpi slt, %32, %4 : vector<4x64xi32>
    %34 = arith.andi %31, %33 : vector<4x64xi1>
    %35 = arith.select %34, %29, %7 : vector<4x64xi1>, vector<4x64xf32>
    %36 = arith.select %34, %27, %8 : vector<4x64xi1>, vector<4x64xf32>
    %c1_i32 = arith.constant 1 : i32
    %37 = arith.addi %6, %c1_i32 : i32
    %c1 = arith.constant 1 : index
    %c0_15 = arith.constant 0 : index
    %c0_16 = arith.constant 0 : index
    %38 = vector.load %arg1[%c1, %c0_15, %c0_16] : memref<4x4x256xf32, #tpu.memory_space<vmem>>, vector<1x4x256xf32>
    %39 = vector.shape_cast %38 : vector<1x4x256xf32> to vector<4x256xf32>
    %cst_17 = arith.constant dense<0.000000e+00> : vector<4x256xf32>
    %40 = tpu.matmul %35, %5, %cst_17 {dimension_numbers = #tpu.dot_dimension_numbers<[1], [0], [0], [1], [0, 0, 1, 1], [], []>} : vector<4x64xf32>, vector<64x256xf32>, vector<4x256xf32> -> vector<4x256xf32>
    %41 = arith.addf %39, %40 : vector<4x256xf32>
    %42 = vector.extract_strided_slice %41 {offsets = [0, 0], sizes = [4, 192], strides = [1, 1]} : vector<4x256xf32> to vector<4x192xf32>
    %43 = arith.negf %42 : vector<4x192xf32>
    %44 = math.exp %43 : vector<4x192xf32>
    %cst_18 = arith.constant 1.000000e+00 : f32
    %45 = vector.broadcast %cst_18 : f32 to vector<4x192xf32>
    %46 = arith.addf %45, %44 : vector<4x192xf32>
    %47 = arith.divf %45, %46 : vector<4x192xf32>
    %48 = vector.extract_strided_slice %41 {offsets = [0, 192], sizes = [4, 64], strides = [1, 1]} : vector<4x256xf32> to vector<4x64xf32>
    %49 = math.tanh %48 : vector<4x64xf32>
    %50 = vector.extract_strided_slice %47 {offsets = [0, 0], sizes = [4, 64], strides = [1, 1]} : vector<4x192xf32> to vector<4x64xf32>
    %51 = vector.extract_strided_slice %47 {offsets = [0, 64], sizes = [4, 64], strides = [1, 1]} : vector<4x192xf32> to vector<4x64xf32>
    %52 = vector.extract_strided_slice %47 {offsets = [0, 128], sizes = [4, 64], strides = [1, 1]} : vector<4x192xf32> to vector<4x64xf32>
    %53 = arith.mulf %51, %36 : vector<4x64xf32>
    %54 = arith.mulf %50, %49 : vector<4x64xf32>
    %55 = arith.addf %53, %54 : vector<4x64xf32>
    %56 = math.tanh %55 : vector<4x64xf32>
    %57 = arith.mulf %52, %56 : vector<4x64xf32>
    %58 = vector.broadcast %37 : i32 to vector<4x64xi32>
    %59 = arith.cmpi sge, %58, %3 : vector<4x64xi32>
    %60 = vector.broadcast %37 : i32 to vector<4x64xi32>
    %61 = arith.cmpi slt, %60, %4 : vector<4x64xi32>
    %62 = arith.andi %59, %61 : vector<4x64xi1>
    %63 = arith.select %62, %57, %35 : vector<4x64xi1>, vector<4x64xf32>
    %64 = arith.select %62, %55, %36 : vector<4x64xi1>, vector<4x64xf32>
    %c2_i32 = arith.constant 2 : i32
    %65 = arith.addi %6, %c2_i32 : i32
    %c2 = arith.constant 2 : index
    %c0_19 = arith.constant 0 : index
    %c0_20 = arith.constant 0 : index
    %66 = vector.load %arg1[%c2, %c0_19, %c0_20] : memref<4x4x256xf32, #tpu.memory_space<vmem>>, vector<1x4x256xf32>
    %67 = vector.shape_cast %66 : vector<1x4x256xf32> to vector<4x256xf32>
    %cst_21 = arith.constant dense<0.000000e+00> : vector<4x256xf32>
    %68 = tpu.matmul %63, %5, %cst_21 {dimension_numbers = #tpu.dot_dimension_numbers<[1], [0], [0], [1], [0, 0, 1, 1], [], []>} : vector<4x64xf32>, vector<64x256xf32>, vector<4x256xf32> -> vector<4x256xf32>
    %69 = arith.addf %67, %68 : vector<4x256xf32>
    %70 = vector.extract_strided_slice %69 {offsets = [0, 0], sizes = [4, 192], strides = [1, 1]} : vector<4x256xf32> to vector<4x192xf32>
    %71 = arith.negf %70 : vector<4x192xf32>
    %72 = math.exp %71 : vector<4x192xf32>
    %cst_22 = arith.constant 1.000000e+00 : f32
    %73 = vector.broadcast %cst_22 : f32 to vector<4x192xf32>
    %74 = arith.addf %73, %72 : vector<4x192xf32>
    %75 = arith.divf %73, %74 : vector<4x192xf32>
    %76 = vector.extract_strided_slice %69 {offsets = [0, 192], sizes = [4, 64], strides = [1, 1]} : vector<4x256xf32> to vector<4x64xf32>
    %77 = math.tanh %76 : vector<4x64xf32>
    %78 = vector.extract_strided_slice %75 {offsets = [0, 0], sizes = [4, 64], strides = [1, 1]} : vector<4x192xf32> to vector<4x64xf32>
    %79 = vector.extract_strided_slice %75 {offsets = [0, 64], sizes = [4, 64], strides = [1, 1]} : vector<4x192xf32> to vector<4x64xf32>
    %80 = vector.extract_strided_slice %75 {offsets = [0, 128], sizes = [4, 64], strides = [1, 1]} : vector<4x192xf32> to vector<4x64xf32>
    %81 = arith.mulf %79, %64 : vector<4x64xf32>
    %82 = arith.mulf %78, %77 : vector<4x64xf32>
    %83 = arith.addf %81, %82 : vector<4x64xf32>
    %84 = math.tanh %83 : vector<4x64xf32>
    %85 = arith.mulf %80, %84 : vector<4x64xf32>
    %86 = vector.broadcast %65 : i32 to vector<4x64xi32>
    %87 = arith.cmpi sge, %86, %3 : vector<4x64xi32>
    %88 = vector.broadcast %65 : i32 to vector<4x64xi32>
    %89 = arith.cmpi slt, %88, %4 : vector<4x64xi32>
    %90 = arith.andi %87, %89 : vector<4x64xi1>
    %91 = arith.select %90, %85, %63 : vector<4x64xi1>, vector<4x64xf32>
    %92 = arith.select %90, %83, %64 : vector<4x64xi1>, vector<4x64xf32>
    %c3_i32 = arith.constant 3 : i32
    %93 = arith.addi %6, %c3_i32 : i32
    %c3 = arith.constant 3 : index
    %c0_23 = arith.constant 0 : index
    %c0_24 = arith.constant 0 : index
    %94 = vector.load %arg1[%c3, %c0_23, %c0_24] : memref<4x4x256xf32, #tpu.memory_space<vmem>>, vector<1x4x256xf32>
    %95 = vector.shape_cast %94 : vector<1x4x256xf32> to vector<4x256xf32>
    %cst_25 = arith.constant dense<0.000000e+00> : vector<4x256xf32>
    %96 = tpu.matmul %91, %5, %cst_25 {dimension_numbers = #tpu.dot_dimension_numbers<[1], [0], [0], [1], [0, 0, 1, 1], [], []>} : vector<4x64xf32>, vector<64x256xf32>, vector<4x256xf32> -> vector<4x256xf32>
    %97 = arith.addf %95, %96 : vector<4x256xf32>
    %98 = vector.extract_strided_slice %97 {offsets = [0, 0], sizes = [4, 192], strides = [1, 1]} : vector<4x256xf32> to vector<4x192xf32>
    %99 = arith.negf %98 : vector<4x192xf32>
    %100 = math.exp %99 : vector<4x192xf32>
    %cst_26 = arith.constant 1.000000e+00 : f32
    %101 = vector.broadcast %cst_26 : f32 to vector<4x192xf32>
    %102 = arith.addf %101, %100 : vector<4x192xf32>
    %103 = arith.divf %101, %102 : vector<4x192xf32>
    %104 = vector.extract_strided_slice %97 {offsets = [0, 192], sizes = [4, 64], strides = [1, 1]} : vector<4x256xf32> to vector<4x64xf32>
    %105 = math.tanh %104 : vector<4x64xf32>
    %106 = vector.extract_strided_slice %103 {offsets = [0, 0], sizes = [4, 64], strides = [1, 1]} : vector<4x192xf32> to vector<4x64xf32>
    %107 = vector.extract_strided_slice %103 {offsets = [0, 64], sizes = [4, 64], strides = [1, 1]} : vector<4x192xf32> to vector<4x64xf32>
    %108 = vector.extract_strided_slice %103 {offsets = [0, 128], sizes = [4, 64], strides = [1, 1]} : vector<4x192xf32> to vector<4x64xf32>
    %109 = arith.mulf %107, %92 : vector<4x64xf32>
    %110 = arith.mulf %106, %105 : vector<4x64xf32>
    %111 = arith.addf %109, %110 : vector<4x64xf32>
    %112 = math.tanh %111 : vector<4x64xf32>
    %113 = arith.mulf %108, %112 : vector<4x64xf32>
    %114 = vector.broadcast %93 : i32 to vector<4x64xi32>
    %115 = arith.cmpi sge, %114, %3 : vector<4x64xi32>
    %116 = vector.broadcast %93 : i32 to vector<4x64xi32>
    %117 = arith.cmpi slt, %116, %4 : vector<4x64xi32>
    %118 = arith.andi %115, %117 : vector<4x64xi1>
    %119 = arith.select %118, %113, %91 : vector<4x64xi1>, vector<4x64xf32>
    %120 = arith.select %118, %111, %92 : vector<4x64xi1>, vector<4x64xf32>
    %c0_27 = arith.constant 0 : index
    %c0_28 = arith.constant 0 : index
    %121 = vector.load %arg6[%c0_27, %c0_28] : memref<4x64xf32, #tpu.memory_space<vmem>>, vector<4x64xf32>
    tpu.vector_store %arg6[%c0_27, %c0_28], %119 {strides = array<i32>} : memref<4x64xf32, #tpu.memory_space<vmem>>, vector<4x64xf32>,
    %c0_29 = arith.constant 0 : index
    %c0_30 = arith.constant 0 : index
    %122 = vector.load %arg7[%c0_29, %c0_30] : memref<4x64xf32, #tpu.memory_space<vmem>>, vector<4x64xf32>
    tpu.vector_store %arg7[%c0_29, %c0_30], %120 {strides = array<i32>} : memref<4x64xf32, #tpu.memory_space<vmem>>, vector<4x64xf32>,
    %c1_i32_31 = arith.constant 1 : i32
    %123 = arith.cmpi eq, %arg0, %c1_i32_31 : i32
    %124 = arith.extui %123 : i1 to i32
    %c0_i32_32 = arith.constant 0 : i32
    %125 = arith.cmpi ne, %124, %c0_i32_32 : i32
    scf.if %125 {
      %c0_33 = arith.constant 0 : index
      %c0_34 = arith.constant 0 : index
      %126 = vector.load %arg5[%c0_33, %c0_34] : memref<4x64xf32, #tpu.memory_space<vmem>>, vector<4x64xf32>
      tpu.vector_store %arg5[%c0_33, %c0_34], %119 {strides = array<i32>} : memref<4x64xf32, #tpu.memory_space<vmem>>, vector<4x64xf32>,
    } else {
    }
    return
  }
  func.func @transform_0(%arg0: i32) -> (i32, i32, i32) {
    %c0_i32 = arith.constant 0 : i32
    %c0_i32_0 = arith.constant 0 : i32
    %c0_i32_1 = arith.constant 0 : i32
    return %arg0, %c0_i32, %c0_i32_0 : i32, i32, i32
  }
  func.func @transform_1(%arg0: i32) -> (i32, i32) {
    %c0_i32 = arith.constant 0 : i32
    %c0_i32_0 = arith.constant 0 : i32
    %c0_i32_1 = arith.constant 0 : i32
    return %c0_i32, %c0_i32_0 : i32, i32
  }
  func.func @transform_2(%arg0: i32) -> (i32, i32) {
    %c0_i32 = arith.constant 0 : i32
    %c0_i32_0 = arith.constant 0 : i32
    %c0_i32_1 = arith.constant 0 : i32
    return %c0_i32, %c0_i32_0 : i32, i32
  }
  func.func @transform_3(%arg0: i32) -> (i32, i32) {
    %c0_i32 = arith.constant 0 : i32
    %c0_i32_0 = arith.constant 0 : i32
    %c0_i32_1 = arith.constant 0 : i32
    return %c0_i32, %c0_i32_0 : i32, i32
  }
  func.func @transform_4(%arg0: i32) -> (i32, i32) {
    %c0_i32 = arith.constant 0 : i32
    %c0_i32_0 = arith.constant 0 : i32
    %c0_i32_1 = arith.constant 0 : i32
    return %c0_i32, %c0_i32_0 : i32, i32
  }
}

</mosaic_0001>

<bundles_post_ra>
// kernel: tpu_custom_call.1
= control target key start
LH: loop header
LB: loop body
LE: loop exit
PB: predicated region body
PF: predicated region fallthrough
CT: control target
= control target key end

     0   :  { %9 = vsyncpa [#allocation5], 0  ;;  %s1558_s0 = inlined_call_operand.hbm [shape: f32[8,4,256], index: 0, kind: input, shape index: {}]   ;;  %s1559_s1 = inlined_call_operand.hbm [shape: s32[4,64], index: 1, kind: input, shape index: {}]   ;;  %s1560_s2 = inlined_call_operand.vmem [shape: s32[4,64], index: 2, kind: input, shape index: {}]   ;;  %s1561_s3 = inlined_call_operand.hbm [shape: f32[64,256], index: 3, kind: input, shape index: {}]   ;;  %s1562_s4 = inlined_call_operand.hbm [shape: f32[4,64], index: 4, kind: output, shape index: {}]  }
   0x1   :  { %11 = vsyncpa [#allocation5 + $0x1], 0 }
   0x2   :  { %12 = vsyncpa [#allocation8], 0 }
   0x3   :  { %13 = vsyncpa [#allocation6], 0  ;;  %s1235_s15 = smov 0   ;;  %s1237_s16 = smov 0  }
   0x4   :  { %s1239_s17 = smov 0   ;;  %s1241_s18 = smov 0  }
   0x5 LB: > { %s1254_s19 = sadd.s32 4294967295, %s1197_s18   ;;  %s1257_s20 = sadd.s32 1, %s1197_s18   ;;  %s1197_s18 = sphi %s1241_s18, %s1585_s18   ;;  %s1193_s17 = sphi %s1239_s17, %s1584_s17   ;;  %s1189_s16 = sphi %s1237_s16, %s1583_s16   ;;  %s1185_s15 = sphi %s1235_s15, %s1582_s15  }
   0x6   : > { %s23_s21 = ssub.s32 %s1197_s18, %s1257_s20  ;;  %s26_s22 = sadd.s32 1, %s1193_s17 }
   0x7   : > { %p24_p0 = scmp.eq.s32.totalorder %s23_s21, 0  ;;  %p33_p1 = scmp.ne.s32.totalorder %s1193_s17, %s1189_s16 }
   0x8   : > { %p34_p2 = scmp.eq.s32.totalorder %s1197_s18, 0  ;;  %p39_p3 = scmp.ne.s32.totalorder %s1189_s16, %s1185_s15 }
   0x9   : > { %s1267_s23 = scalar_select %p24_p0, %s1193_s17, %s26_s22  }
   0xa   : > { %p1269_p4 = por %p34_p2, %p33_p1  ;;  %p1563_p5 = scmp.eq.s32.totalorder %s1254_s19, 0 }
   0xb   : > { %p841_p6 = scmp.ge.s32.totalorder %s1197_s18, 1  ;;  %p134_p7 = scmp.lt.s32.totalorder %s1197_s18, 3 }
   0xc   : > { %p1278_p8 = por %p1563_p5, %p39_p3  ;;  %s1199_s27 = smov [#allocation7]  }
   0xd   : > { %p1283_p10 = pnand %p841_p6, %p134_p7  ;;  %s147_s28 = sshll.u32 %s1199_s27, 4  ;;  %s148_s28 = int_to_ptr.vmem [resolvable:$true] %s147_s28 }
   0xe   : > { %s1568_s25 = scalar_select %p1278_p8, 1, 0 }
   0xf   : > { %s1569_s26 = scalar_select %p1283_p10, 1, 0 }
  0x10   : > { %p951_p11 = pneg %p1283_p10  ;;  %p964_p12 = scmp.lt.s32.totalorder %s1197_s18, 2 }
  0x11   : > { %s1200_s30 = smov [#allocation9]   ;;  %s1043_s9 = scalar_lea.hbm %s1559_s1, 64 }
  0x12   : > { %p1292_p13 = pnand %p951_p11, %p1563_p5  ;;  %s160_s5 = sshll.u32 %s1200_s30, 4  ;;  %s1302_s5 = int_to_ptr.vmem [resolvable:$true] %s160_s5 }
  0x13   : > { %p1298_p0 = pnand %p964_p12, %p1269_p4  ;;  %p1044_p1 = scmp.ne.s32.totalorder %s1559_s1, %s1043_s9 }
  0x14   : > { %p1045_p2 = pneg %p1292_p13  ;;  %p1050_p4 = scmp.lt.u32.totalorder %s1043_s9, %s1559_s1 }
  0x15   : > { %s1571_s6 = scalar_select %p1298_p0, 1, 0 }
  0x16   : > { %p1046_p3 = pnand %p1045_p2, %p1044_p1 }
  0x18   : > { %p1047_p6 = pneg %p1046_p3 }
  0x1a   : > { %p1052_p7 = pnand %p1050_p4, %p1047_p6 }
  0x1c   : > { %1055 = shalt.err (!%p1052_p7)
}
  0x1d   : > { %s1056_s14 = scalar_lea.vmem %s148_s28, 64  ;;  %p1064_p5 = scmp.lt.s32.totalorder %s148_s28, %s148_s28 }
  0x1e   : > { %p1057_p11 = scmp.ne.s32.totalorder %s148_s28, %s1056_s14  ;;  %p1065_p8 = scmp.lt.s32.totalorder %s1056_s14, %s1056_s14 }
  0x20   : > { %p1059_p12 = pnand %p1057_p11, %p1045_p2  ;;  %p1066_p10 = por %p1065_p8, %p1064_p5 }
  0x22   : > { %p1060_p9 = pneg %p1059_p12 }
  0x24   : > { %p1067_p0 = pnand %p1066_p10, %p1060_p9 }
  0x26   : > { %1070 = shalt.err (!%p1067_p0)
}
  0x27   : > { %954 = dma.hbm_to_vmem [thread:$0]  (!%p1292_p13), %s1559_s1, 64, %s148_s28, [#allocation8]  }
  0x28   : > { %s1071_s27 = scalar_lea.hbm %s1561_s3, 2048 }
  0x29   : > { %p1072_p1 = scmp.ne.s32.totalorder %s1561_s3, %s1071_s27  ;;  %p1078_p9 = scmp.lt.u32.totalorder %s1071_s27, %s1561_s3 }
  0x2b   : > { %p1074_p5 = pnand %p1072_p1, %p1045_p2 }
  0x2d   : > { %p1075_p8 = pneg %p1074_p5 }
  0x2f   : > { %p1080_p10 = pnand %p1078_p9, %p1075_p8 }
  0x31   : > { %1083 = shalt.err (!%p1080_p10)
}
  0x32   : > { %s1084_s28 = scalar_lea.vmem %s1302_s5, 2048  ;;  %p1092_p4 = scmp.lt.s32.totalorder %s1302_s5, %s1302_s5 }
  0x33   : > { %p1085_p0 = scmp.ne.s32.totalorder %s1302_s5, %s1084_s28  ;;  %p1093_p7 = scmp.lt.s32.totalorder %s1084_s28, %s1084_s28 }
  0x35   : > { %p1087_p3 = pnand %p1085_p0, %p1045_p2  ;;  %p1094_p11 = por %p1093_p7, %p1092_p4 }
  0x37   : > { %p1088_p6 = pneg %p1087_p3 }
  0x39   : > { %p1095_p12 = pnand %p1094_p11, %p1088_p6 }
  0x3b   : > { %1098 = shalt.err (!%p1095_p12)
}
  0x3c   : > { %s1201_s10 = smov 256   ;;  %s1202_s11 = smov 16  }
  0x3d   : > { %957 = dma.hbm_to_vmem [thread:$0]  (!%p1292_p13), %s1561_s3, 2048, %s1302_s5, [#allocation8], %s1201_s10, %s1201_s10, %s1202_s11  }
  0x3e   : > { %s174_s14 = sand.u32 1, %s1193_s17   ;;  %s872_s15 = sshll.u32 %s1197_s18, 9 }
  0x3f   : > { %s845_s21 = sshll.u32 %s174_s14, 5  ;;  %s1356_s27 = scalar_lea.hbm %s1558_s0, %s872_s15 }
  0x40   : > { %s178_s30 = scalar_lea.vmem [#allocation4], %s845_s21  ;;  %s1360_s29 = scalar_lea.sflag [#allocation5], %s174_s14 }
  0x41   : > { %s186_s7 = sshll.u32 %s178_s30, 4  ;;  %s1099_s8 = scalar_lea.hbm %s1356_s27, 512  ;;  %s1358_s7 = int_to_ptr.vmem [resolvable:$true] %s186_s7 }
  0x42   : > { %p1100_p13 = scmp.ne.s32.totalorder %s1356_s27, %s1099_s8  ;;  %p1572_p2 = scmp.ne.s32.totalorder %s1571_s6, 0 }
  0x43   : > { %s1104_s9 = scalar_lea.hbm %s1558_s0, 1024  ;;  %p1105_p9 = scmp.lt.u32.totalorder %s1356_s27, %s1558_s0 }
  0x44   : > { %p1101_p1 = pneg %p1572_p2  ;;  %p1106_p10 = scmp.lt.u32.totalorder %s1104_s9, %s1099_s8 }
  0x45   : > { %p1108_p3 = scmp.lt.u32.totalorder %s1099_s8, %s1356_s27 }
  0x46   : > { %p1102_p5 = pnand %p1101_p1, %p1100_p13  ;;  %p1107_p0 = por %p1106_p10, %p1105_p9 }
  0x48   : > { %p1103_p8 = pneg %p1102_p5  ;;  %p1109_p6 = por %p1108_p3, %p1107_p0 }
  0x4a   : > { %p1110_p4 = pnand %p1109_p6, %p1103_p8 }
  0x4c   : > { %1113 = shalt.err (!%p1110_p4)
}
  0x4d   : > { %s1114_s11 = scalar_lea.vmem %s1358_s7, 512  ;;  %s1203_s12 = smov [#allocation4]  }
  0x4e   : > { %p1115_p7 = scmp.ne.s32.totalorder %s1358_s7, %s1114_s11  ;;  %s1119_s13 = sshll.u32 %s1203_s12, 4  ;;  %s1120_s13 = int_to_ptr.vmem [resolvable:$false] %s1119_s13 }
  0x4f   : > { %s1121_s14 = scalar_lea.vmem %s1120_s13, 1024  ;;  %p1122_p13 = scmp.lt.s32.totalorder %s1358_s7, %s1120_s13 }
  0x50   : > { %p1117_p11 = pnand %p1115_p7, %p1101_p1  ;;  %p1123_p5 = scmp.lt.s32.totalorder %s1121_s14, %s1114_s11 }
  0x52   : > { %p1118_p12 = pneg %p1117_p11  ;;  %p1124_p9 = por %p1123_p5, %p1122_p13 }
  0x54   : > { %p1125_p10 = pnand %p1124_p9, %p1118_p12 }
  0x56   : > { %1128 = shalt.err (!%p1125_p10)
}
  0x57   : > { %s1204_s15 = smov 128   ;;  %s1205_s21 = smov 8  }
  0x58   : > { %961 = dma.hbm_to_vmem [thread:$0]  (!%p1572_p2), %s1356_s27, 512, %s1358_s7, %s1360_s29, %s1204_s15, %s1204_s15, %s1205_s21  }
  0x59   : > { %p1573_p1 = scmp.ne.s32.totalorder %s1569_s26, 0 }
  0x5a   : > { %s200_s22 = sand.u32 (!%p1573_p1), 1, %s1189_s16   ;;  %p1574_p8 = scmp.ne.s32.totalorder (!%p1573_p1), %s1568_s25, 0 }
  0x5b   : > { %198 = sbr.rel (%p1573_p1) target bundleno = 2528 (0x9e0), region = 36  ;;  %s850_s24 = sshll.u32 (!%p1573_p1), %s200_s22, 5 }
  0x5c   : > { %s201_s30 = scalar_lea.sflag (!%p1573_p1), [#allocation5], %s200_s22  ;;  %s1391_s8 = scalar_lea.vmem (!%p1573_p1), [#allocation4], %s850_s24 }
  0x62   : > { %1172 = dma.done.wait (%p1574_p8), %s201_s30, 512  }
  0x63   : > { %1174 = vsyncadd (%p1574_p8), %s201_s30, 4294966784  ;;  %p1575_p0 = scmp.eq.s32.totalorder %s1254_s19, 0 }
  0x65   : > { %1176 = dma.done.wait (%p1575_p0), [#allocation8], 2112   ;;  %p1576_p2 = pmov %p1575_p0 }
  0x66   : > { %p1577_p3 = scmp.ne.s32.totalorder %s1254_s19, 0 }
  0x67   : > { %1178 = vsyncadd (%p1576_p2), [#allocation8], 4294965184  ;;  %vm237_vm0 = vcmask (!%p1577_p3), 519168   ;;  %v1206_v0 = vmov (!%p1577_p3), 0.0  }
  0x68   : > { %236 = sbr.rel (%p1577_p3) target bundleno = 111 (0x6f), region = 52  ;;  %238 = vst.msk [vmem:[#allocation2] sm:$0xf] (!%p1577_p3), %vm237_vm0, %v1206_v0  ;;  %239 = vst.msk [vmem:[#allocation3] sm:$0xf] (!%p1577_p3), %vm237_vm0, %v1206_v0 }
  0x6f PF: > { %v243_v1 = vld [vmem:[#allocation9 + $0x8] sm:$0xff]  ;;  %v245_v2 = vld [vmem:[#allocation9 + $0x18] sm:$0xff]  ;;  %v242_v3 = vld [vmem:[#allocation9] sm:$0xff]  ;;  %v1207_v8 = vmov 0.0   ;;  %vm262_vm1 = vcmask 523264   ;;  %s1208_s25 = smov 64  }
  0x70   : > { %v873_v4 = vpack.c.bf16 %v245_v2, %v243_v1  ;;  %v244_v5 = vld [vmem:[#allocation9 + $0x10] sm:$0xff]  ;;  %v247_v6 = vld [vmem:[#allocation9 + $0x28] sm:$0xff]  ;;  %v249_v7 = vld [vmem:[#allocation9 + $0x38] sm:$0xff]  ;;  %330 = vmatprep.mubr.f32.mxu0 %v1207_v8  ;;  %454 = vmatprep.mubr.f32.mxu1 %v1207_v8  ;;  %s1449_s26 = sshll.u32 %s1254_s19, 2  ;;  %vm756_vm14 = vcmask 519168   ;;  %p866_p6 = scmp.ne.s32.totalorder %s1254_s19, 1 }
  0x71   : > { %v1405_v9 = vpack.c.bf16 %v244_v5, %v242_v3  ;;  %v1407_v10 = vpack.c.bf16 %v249_v7, %v247_v6  ;;  %v246_v11 = vld [vmem:[#allocation9 + $0x20] sm:$0xff]  ;;  %v248_v12 = vld [vmem:[#allocation9 + $0x30] sm:$0xff]  ;;  %v251_v13 = vld [vmem:[#allocation9 + $0x48] sm:$0xff]  ;;  %v374_v48 = vstv %s1449_s26  ;;  %s384_s7 = sadd.s32 1, %s1449_s26  ;;  %s508_s29 = sadd.s32 2, %s1449_s26 }
  0x72   : > { %874 = vmatprep.subr.bf16.mxu0 %v873_v4  ;;  %v253_v14 = vld [vmem:[#allocation9 + $0x58] sm:$0xff]  ;;  %890 = vmatprep.subr.bf16.mxu1 %v873_v4  ;;  %v1410_v15 = vpack.c.bf16 %v248_v12, %v246_v11  ;;  %v250_v17 = vld [vmem:[#allocation9 + $0x40] sm:$0xff]  ;;  %v252_v18 = vld [vmem:[#allocation9 + $0x50] sm:$0xff]  ;;  %v498_v11 = vstv %s384_s7  ;;  %s632_s18 = sadd.s32 3, %s1449_s26 }
  0x73   : > { %876 = vmatpush1.bf16.msra.mxu0 %v1405_v9  ;;  %892 = vmatpush1.bf16.msra.mxu1 %v1405_v9  ;;  %v1414_v16 = vpack.c.bf16 %v253_v14, %v251_v13  ;;  %v255_v19 = vld [vmem:[#allocation9 + $0x68] sm:$0xff]  ;;  %v257_v20 = vld [vmem:[#allocation9 + $0x78] sm:$0xff]  ;;  %v1418_v21 = vpack.c.bf16 %v252_v18, %v250_v17  ;;  %v254_v23 = vld [vmem:[#allocation9 + $0x60] sm:$0xff] }
  0x74   : > { %878 = vmatprep.subr.bf16.mxu0 %v1407_v10  ;;  %894 = vmatprep.subr.bf16.mxu1 %v1407_v10  ;;  %v1422_v22 = vpack.c.bf16 %v257_v20, %v255_v19  ;;  %v256_v24 = vld [vmem:[#allocation9 + $0x70] sm:$0xff]  ;;  %v261_v29 = vld [vmem:[%s1391_s8] sm:$0xff]  ;;  %v260_v32 = vld [vmem:[#allocation3] sm:$0xf] }
  0x75   : > { %v1426_v25 = vpack.c.bf16 %v256_v24, %v254_v23  ;;  %v259_v26 = vld [vmem:[#allocation2] sm:$0xf]  ;;  %v1451_v46 = vld [vmem:[#allocation7] sm:$0xf]  ;;  %v857_v56 = vld [vmem:[%s1391_s8 + $0x8] sm:$0xff] }
  0x76   : > { %v1456_v47 = vld [vmem:[%s1560_s2] sm:$0xf]  ;;  %vm1460_vm2 = vcmp.ge.s32.totalorder %v374_v48, %v1451_v46  ;;  %vm499_vm5 = vcmp.ge.s32.totalorder %v498_v11, %v1451_v46  ;;  %v860_v17 = vld [vmem:[%s1391_s8 + $0x10] sm:$0xff] }
  0x77   : > { %880 = vmatpush1.bf16.msra.mxu0 %v1410_v15  ;;  %896 = vmatpush1.bf16.msra.mxu1 %v1410_v15  ;;  %vm1465_vm3 = vcmp.lt.s32.totalorder %v374_v48, %v1456_v47  ;;  %vm500_vm6 = vcmp.lt.s32.totalorder %v498_v11, %v1456_v47 }
  0x78   : > { %882 = vmatprep.subr.bf16.mxu0 %v1414_v16  ;;  %898 = vmatprep.subr.bf16.mxu1 %v1414_v16  ;;  %vm377_vm4 = vmand %vm1460_vm2, %vm1465_vm3 }
  0x79   : > { %vm501_vm7 = vmand %vm499_vm5, %vm500_vm6 }
  0x7b   : > { %884 = vmatpush1.bf16.msra.mxu0 %v1418_v21  ;;  %900 = vmatpush1.bf16.msra.mxu1 %v1418_v21 }
  0x7c   : > { %886 = vmatprep.subr.bf16.mxu0 %v1422_v22  ;;  %902 = vmatprep.subr.bf16.mxu1 %v1422_v22 }
  0x7f   : > { %888 = vmatpush1.bf16.msra.mxu0 %v1426_v25  ;;  %904 = vmatpush1.bf16.msra.mxu1 %v1426_v25 }
  0x80   : > { %906 = vmatprep.subr.bf16.mxu0 %v873_v4  ;;  %922 = vmatprep.subr.bf16.mxu1 %v873_v4 }
  0x82   : > { %855 = vmatmul.mubr.msk.f32.vlgmr.msra.gmra.mrb[0].mxu0 %vm262_vm1, %v259_v26 }
  0x83   : > { %908 = vmatpush1.bf16.msra.mxu0 %v1405_v9  ;;  %578 = vmatprep.mubr.f32.mxu0 %v1207_v8 }
  0x84   : > { %910 = vmatprep.subr.bf16.mxu0 %v1407_v10 }
  0x87   : > { %912 = vmatpush1.bf16.msra.mxu0 %v1410_v15 }
  0x88   : > { %914 = vmatprep.subr.bf16.mxu0 %v1414_v16 }
  0x8b   : > { %916 = vmatpush1.bf16.msra.mxu0 %v1418_v21 }
  0x8c   : > { %918 = vmatprep.subr.bf16.mxu0 %v1422_v22 }
  0x8f   : > { %920 = vmatpush1.bf16.msra.mxu0 %v1426_v25 }
 0x155   : > { %v332_v27 = vpop.f32.mrb[0].mxu0 }
 0x156   : > { %v334_v28 = vpop.f32.mrb[1].mxu0 }
 0x157   : > { %v339_v30 = vcombine.low %v332_v27, %v334_v28 }
 0x159   : > { %v341_v31 = vadd.f32 %v339_v30, %v261_v29 }
 0x15b   : > { %349 = vrot.lane.b32.xlu0 %v341_v31, %s1208_s25  ;;  %v856_v33 = vmul.f32 -1.442695, %v341_v31 }
 0x15d   : > { %1011 = vpow2.f32 %v856_v33 }
 0x15f   : > { %355 = vrot.lane.b32.xlu0 %v260_v32, %s1208_s25 }
 0x167   : > { %v1012_v34 = vpop.eup %1011 }
 0x168   : > { %v345_v35 = vadd.f32 1.0, %v1012_v34 }
 0x16a   : > { %1013 = vrcp.f32 %v345_v35 }
 0x174   : > { %v1014_v38 = vpop.eup %1013 }
 0x175   : > { %v367_v51 = vrot.slane %v1014_v38, 4 }
 0x1cd   : > { %v350_v36 = vpop.permute.xlu0 %349 }
 0x1ce   : > { %v351_v37 = vrot.slane %v350_v36, 4  ;;  %v622_v36 = vstv %s508_s29 }
 0x1cf   : > { %vm623_vm8 = vcmp.ge.s32.totalorder %v622_v36, %v1451_v46  ;;  %vm624_vm9 = vcmp.lt.s32.totalorder %v622_v36, %v1456_v47 }
 0x1d0   : > { %1015 = vtanh.f32 %v351_v37  ;;  %vm625_vm10 = vmand %vm623_vm8, %vm624_vm9 }
 0x1d1   : > { %v356_v41 = vpop.permute.xlu0 %355 }
 0x1d2   : > { %v358_v42 = vmul.f32 %v1014_v38, %v356_v41 }
 0x1da   : > { %v1016_v39 = vpop.eup %1015 }
 0x1db   : > { %v359_v40 = vmul.f32 %v1016_v39, %v1014_v38 }
 0x1dd   : > { %361 = vrot.lane.b32.xlu1 %v359_v40, %s1208_s25 }
 0x24f   : > { %v362_v43 = vpop.permute.xlu1 %361 }
 0x250   : > { %v364_v44 = vadd.f32 %v362_v43, %v358_v42  ;;  %v863_v42 = vld [vmem:[%s1391_s8 + $0x18] sm:$0xff] }
 0x252   : > { %1017 = vtanh.f32 %v364_v44 }
 0x25c   : > { %v1018_v45 = vpop.eup %1017 }
 0x25d   : > { %370 = vrot.lane.b32.xlu1 %v1018_v45, %s1208_s25 }
 0x261   : > { %380 = vrot.lane.b32.xlu1 %v364_v44, %s1208_s25 }
 0x2cf   : > { %v371_v52 = vpop.permute.xlu1 %370 }
 0x2d0   : > { %v373_v53 = vmul.f32 %v371_v52, %v367_v51 }
 0x2d2   : > { %v378_v54 = vsel %vm377_vm4, %v373_v53, %v259_v26 }
 0x2d3   : > { %858 = vmatmul.mubr.msk.f32.vlgmr.msra.gmra.mrb[0].mxu1 %vm262_vm1, %v378_v54  ;;  %v381_v60 = vpop.permute.xlu1 %380 }
 0x2d4   : > { %924 = vmatpush1.bf16.msra.mxu1 %v1405_v9  ;;  %702 = vmatprep.mubr.f32.mxu1 %v1207_v8  ;;  %v383_v61 = vsel %vm377_vm4, %v381_v60, %v260_v32 }
 0x2d5   : > { %926 = vmatprep.subr.bf16.mxu1 %v1407_v10 }
 0x2d8   : > { %928 = vmatpush1.bf16.msra.mxu1 %v1410_v15 }
 0x2d9   : > { %930 = vmatprep.subr.bf16.mxu1 %v1414_v16 }
 0x2dc   : > { %932 = vmatpush1.bf16.msra.mxu1 %v1418_v21 }
 0x2dd   : > { %934 = vmatprep.subr.bf16.mxu1 %v1422_v22 }
 0x2e0   : > { %936 = vmatpush1.bf16.msra.mxu1 %v1426_v25 }
 0x3a6   : > { %v456_v55 = vpop.f32.mrb[0].mxu1 }
 0x3a7   : > { %v458_v57 = vpop.f32.mrb[1].mxu1 }
 0x3a8   : > { %v463_v58 = vcombine.low %v456_v55, %v458_v57 }
 0x3aa   : > { %v465_v59 = vadd.f32 %v857_v56, %v463_v58 }
 0x3ac   : > { %473 = vrot.lane.b32.xlu0 %v465_v59, %s1208_s25  ;;  %v859_v62 = vmul.f32 -1.442695, %v465_v59 }
 0x3ae   : > { %1019 = vpow2.f32 %v859_v62 }
 0x3b0   : > { %479 = vrot.lane.b32.xlu0 %v383_v61, %s1208_s25 }
 0x3b8   : > { %v1020_v63 = vpop.eup %1019 }
 0x3b9   : > { %v469_v0 = vadd.f32 1.0, %v1020_v63  ;;  %v746_v63 = vstv %s632_s18 }
 0x3ba   : > { %vm747_vm11 = vcmp.ge.s32.totalorder %v746_v63, %v1451_v46  ;;  %vm748_vm12 = vcmp.lt.s32.totalorder %v746_v63, %v1456_v47 }
 0x3bb   : > { %1021 = vrcp.f32 %v469_v0  ;;  %vm749_vm13 = vmand %vm747_vm11, %vm748_vm12 }
 0x3c5   : > { %v1022_v3 = vpop.eup %1021 }
 0x3c6   : > { %v491_v12 = vrot.slane %v1022_v3, 4 }
 0x41e   : > { %v474_v1 = vpop.permute.xlu0 %473 }
 0x41f   : > { %v475_v2 = vrot.slane %v474_v1, 4 }
 0x421   : > { %1023 = vtanh.f32 %v475_v2 }
 0x422   : > { %v480_v6 = vpop.permute.xlu0 %479 }
 0x423   : > { %v482_v7 = vmul.f32 %v1022_v3, %v480_v6 }
 0x42b   : > { %v1024_v4 = vpop.eup %1023 }
 0x42c   : > { %v483_v5 = vmul.f32 %v1024_v4, %v1022_v3 }
 0x42e   : > { %485 = vrot.lane.b32.xlu1 %v483_v5, %s1208_s25 }
 0x4a0   : > { %v486_v8 = vpop.permute.xlu1 %485 }
 0x4a1   : > { %v488_v9 = vadd.f32 %v486_v8, %v482_v7 }
 0x4a3   : > { %1025 = vtanh.f32 %v488_v9 }
 0x4ad   : > { %v1026_v10 = vpop.eup %1025 }
 0x4ae   : > { %494 = vrot.lane.b32.xlu0 %v1026_v10, %s1208_s25 }
 0x4b2   : > { %504 = vrot.lane.b32.xlu0 %v488_v9, %s1208_s25 }
 0x520   : > { %v495_v13 = vpop.permute.xlu0 %494 }
 0x521   : > { %v497_v14 = vmul.f32 %v495_v13, %v491_v12 }
 0x523   : > { %v502_v15 = vsel %vm501_vm7, %v497_v14, %v378_v54 }
 0x524   : > { %861 = vmatmul.mubr.msk.f32.vlgmr.msra.gmra.mrb[2].mxu0 %vm262_vm1, %v502_v15  ;;  %v505_v21 = vpop.permute.xlu0 %504 }
 0x525   : > { %v507_v22 = vsel %vm501_vm7, %v505_v21, %v383_v61 }
 0x5f7   : > { %v580_v16 = vpop.f32.mrb[2].mxu0 }
 0x5f8   : > { %v582_v18 = vpop.f32.mrb[3].mxu0 }
 0x5f9   : > { %v587_v19 = vcombine.low %v580_v16, %v582_v18 }
 0x5fb   : > { %v589_v20 = vadd.f32 %v860_v17, %v587_v19 }
 0x5fd   : > { %597 = vrot.lane.b32.xlu1 %v589_v20, %s1208_s25  ;;  %v862_v23 = vmul.f32 -1.442695, %v589_v20 }
 0x5ff   : > { %1027 = vpow2.f32 %v862_v23 }
 0x601   : > { %603 = vrot.lane.b32.xlu1 %v507_v22, %s1208_s25 }
 0x609   : > { %v1028_v24 = vpop.eup %1027 }
 0x60a   : > { %v593_v25 = vadd.f32 1.0, %v1028_v24 }
 0x60c   : > { %1029 = vrcp.f32 %v593_v25 }
 0x616   : > { %v1030_v28 = vpop.eup %1029 }
 0x617   : > { %v615_v37 = vrot.slane %v1030_v28, 4 }
 0x66f   : > { %v598_v26 = vpop.permute.xlu1 %597 }
 0x670   : > { %v599_v27 = vrot.slane %v598_v26, 4 }
 0x672   : > { %1031 = vtanh.f32 %v599_v27 }
 0x673   : > { %v604_v31 = vpop.permute.xlu1 %603 }
 0x674   : > { %v606_v32 = vmul.f32 %v1030_v28, %v604_v31 }
 0x67c   : > { %v1032_v29 = vpop.eup %1031 }
 0x67d   : > { %v607_v30 = vmul.f32 %v1032_v29, %v1030_v28 }
 0x67f   : > { %609 = vrot.lane.b32.xlu0 %v607_v30, %s1208_s25 }
 0x6f1   : > { %v610_v33 = vpop.permute.xlu0 %609 }
 0x6f2   : > { %v612_v34 = vadd.f32 %v610_v33, %v606_v32 }
 0x6f4   : > { %1033 = vtanh.f32 %v612_v34 }
 0x6fe   : > { %v1034_v35 = vpop.eup %1033 }
 0x6ff   : > { %618 = vrot.lane.b32.xlu1 %v1034_v35, %s1208_s25 }
 0x703   : > { %628 = vrot.lane.b32.xlu1 %v612_v34, %s1208_s25 }
 0x771   : > { %v619_v38 = vpop.permute.xlu1 %618 }
 0x772   : > { %v621_v39 = vmul.f32 %v619_v38, %v615_v37 }
 0x774   : > { %v626_v40 = vsel %vm625_vm10, %v621_v39, %v502_v15 }
 0x775   : > { %864 = vmatmul.mubr.msk.f32.vlgmr.msra.gmra.mrb[2].mxu1 %vm262_vm1, %v626_v40  ;;  %v629_v48 = vpop.permute.xlu1 %628 }
 0x776   : > { %v631_v49 = vsel %vm625_vm10, %v629_v48, %v507_v22 }
 0x848   : > { %v704_v41 = vpop.f32.mrb[2].mxu1 }
 0x849   : > { %v706_v43 = vpop.f32.mrb[3].mxu1 }
 0x84a   : > { %v711_v44 = vcombine.low %v704_v41, %v706_v43 }
 0x84c   : > { %v713_v45 = vadd.f32 %v863_v42, %v711_v44 }
 0x84e   : > { %721 = vrot.lane.b32.xlu0 %v713_v45, %s1208_s25  ;;  %v865_v50 = vmul.f32 -1.442695, %v713_v45 }
 0x850   : > { %1035 = vpow2.f32 %v865_v50 }
 0x852   : > { %727 = vrot.lane.b32.xlu0 %v631_v49, %s1208_s25 }
 0x85a   : > { %v1036_v51 = vpop.eup %1035 }
 0x85b   : > { %v717_v52 = vadd.f32 1.0, %v1036_v51 }
 0x85d   : > { %1037 = vrcp.f32 %v717_v52 }
 0x867   : > { %v1038_v55 = vpop.eup %1037 }
 0x868   : > { %v739_v2 = vrot.slane %v1038_v55, 4 }
 0x8c0   : > { %v722_v53 = vpop.permute.xlu0 %721 }
 0x8c1   : > { %v723_v54 = vrot.slane %v722_v53, 4 }
 0x8c3   : > { %1039 = vtanh.f32 %v723_v54 }
 0x8c4   : > { %v728_v58 = vpop.permute.xlu0 %727 }
 0x8c5   : > { %v730_v59 = vmul.f32 %v1038_v55, %v728_v58 }
 0x8cd   : > { %v1040_v56 = vpop.eup %1039 }
 0x8ce   : > { %v731_v57 = vmul.f32 %v1040_v56, %v1038_v55 }
 0x8d0   : > { %733 = vrot.lane.b32.xlu1 %v731_v57, %s1208_s25 }
 0x942   : > { %v734_v60 = vpop.permute.xlu1 %733 }
 0x943   : > { %v736_v61 = vadd.f32 %v734_v60, %v730_v59 }
 0x945   : > { %1041 = vtanh.f32 %v736_v61  ;;  %752 = vrot.lane.b32.xlu1 %v736_v61, %s1208_s25 }
 0x94f   : > { %v1042_v62 = vpop.eup %1041 }
 0x950   : > { %742 = vrot.lane.b32.xlu0 %v1042_v62, %s1208_s25 }
 0x9b7   : > { %v753_v0 = vpop.permute.xlu1 %752 }
 0x9b8   : > { %v755_v1 = vsel %vm749_vm13, %v753_v0, %v631_v49 }
 0x9b9   : > { %758 = vst.msk [vmem:[#allocation3] sm:$0xf] %vm756_vm14, %v755_v1 }
 0x9c0   : > { %762 = sbr.rel (%p866_p6) target bundleno = 2503 (0x9c7), region = 56 }
 0x9c2   : > { %v743_v3 = vpop.permute.xlu0 %742 }
 0x9c3   : > { %v745_v4 = vmul.f32 %v743_v3, %v739_v2 }
 0x9c5   : > { %v750_v5 = vsel %vm749_vm13, %v745_v4, %v626_v40 }
 0x9c6   : > { %757 = vst.msk [vmem:[#allocation2] sm:$0xf] %vm756_vm14, %v750_v5  ;;  %763 = vst.msk [vmem:[#allocation10] sm:$0xf] (!%p866_p6), %vm756_vm14, %v750_v5 }
 0x9c7 PF: > { %p967_p4 = scmp.eq.s32.totalorder %s1254_s19, 1  ;;  %s1209_s5 = smov [#allocation10]  }
 0x9c8   : > { %s771_s9 = sshll.u32 %s1209_s5, 4  ;;  %s772_s9 = int_to_ptr.vmem [resolvable:$true] %s771_s9 }
 0x9c9   : > { %s1129_s28 = scalar_lea.vmem %s772_s9, 64  ;;  %p1136_p13 = scmp.lt.s32.totalorder %s772_s9, %s772_s9 }
 0x9ca   : > { %p1130_p7 = scmp.ne.s32.totalorder %s772_s9, %s1129_s28  ;;  %p1137_p5 = scmp.lt.s32.totalorder %s1129_s28, %s1129_s28 }
 0x9cc   : > { %p1131_p11 = pnand %p1130_p7, %p967_p4  ;;  %p1138_p9 = por %p1137_p5, %p1136_p13 }
 0x9ce   : > { %p1132_p12 = pneg %p1131_p11 }
 0x9d0   : > { %p1139_p10 = pnand %p1138_p9, %p1132_p12 }
 0x9d2   : > { %1142 = shalt.err (!%p1139_p10)
}
 0x9d3   : > { %s1143_s12 = scalar_lea.hbm %s1562_s4, 64 }
 0x9d4   : > { %p1144_p1 = scmp.ne.s32.totalorder %s1562_s4, %s1143_s12  ;;  %p1149_p2 = scmp.lt.u32.totalorder %s1143_s12, %s1562_s4 }
 0x9d6   : > { %p1145_p8 = pnand %p1144_p1, %p967_p4 }
 0x9d8   : > { %p1146_p0 = pneg %p1145_p8 }
 0x9da   : > { %p1151_p3 = pnand %p1149_p2, %p1146_p0 }
 0x9dc   : > { %1154 = shalt.err (!%p1151_p3)
}
 0x9dd   : > { %948 = dma.vmem_to_hbm [thread:$0]  (%p967_p4), %s772_s9, 64, %s1562_s4, [#allocation6]  }
 0x9de   : > { %1180 = dma.done.wait (%p967_p4), [#allocation6], 64  }
 0x9df   : > { %1182 = vsyncadd (%p967_p4), [#allocation6], 4294967232 }
 0x9e0 PF: > { %p16_p6 = scmp.ge.s32.totalorder %s1257_s20, 4   ;;  %s1582_s15 = smov %s1189_s16 }
 0x9e1   : > { %s1583_s16 = smov %s1193_s17  ;;  %s1584_s17 = smov %s1267_s23 }
 0x9e2   : > { %s1585_s18 = smov %s1257_s20  ;;  %18 = sbr.rel (!%p16_p6) target bundleno = 5 (0x5), region = 92 }
 0x9e9   :  { %784 = vsyncpa [#allocation5], 1 }
 0x9ea   :  { %786 = vsyncpa [#allocation5 + $0x1], 1 }
 0x9eb   :  { %787 = vsyncpa [#allocation8], 1 }
 0x9ec   :  { %788 = vsyncpa [#allocation6], 1 }
 0x9ed   :  { %790 = vsyncpa [#allocation6 + $0x1], 1 }

</bundles_post_ra>
